<compile_context>
chip_gen: v5e
topology: v5e:2x2
jax: 0.10.0
libtpu: 0.0.40
codegen_flags: <defaults>
</compile_context>

<pallas_src>
import functools
import math

import jax
import jax.numpy as jnp
from jax.experimental import pallas as pl
from jax.experimental.pallas import tpu as pltpu

LN_EPS = 1e-5  # torch.nn.LayerNorm default


def _layernorm(x, gamma, beta):
    mean = jnp.mean(x, axis=-1, keepdims=True)
    var = jnp.mean((x - mean) ** 2, axis=-1, keepdims=True)
    inv = jax.lax.rsqrt(var + LN_EPS)
    return (x - mean) * inv * gamma + beta


def _gelu_tanh(x):
    # tanh-approx GELU: transcendental goes to the EUP slot instead of a
    # ~12-op VALU erf polynomial.
    # TODO(synk): torch.nn.GELU() uses exact erf; tanh approx differs by ~1e-3.
    c = math.sqrt(2.0 / math.pi)
    return 0.5 * x * (1.0 + jnp.tanh(c * (x + 0.044715 * x * x * x)))


# -------------------- fused whole-transformer kernel --------------------
def _transformer_kernel(x_ref, g1_ref, be1_ref, wq_ref, wk_ref, wv_ref,
                        wo_ref, bo_ref, g2_ref, be2_ref, w1_ref, b1_ref,
                        w2_ref, b2_ref, o_ref, act_ref, *, heads, dim_head):
    layer = pl.program_id(1)

    # Layer 0 of each batch block: load the input activation into the carry.
    @pl.when(layer == 0)
    def _():
        act_ref[...] = x_ref[...]

    x = act_ref[...]                                        # (N, D)
    n, d = x.shape

    # ---------- PreNorm + multi-head self-attention + residual ----------
    ln = _layernorm(x, g1_ref[...], be1_ref[...])           # (N, D)
    ln_h = jnp.broadcast_to(ln, (heads, n, d))              # (H, N, D)

    # Head-batched projections (weights are head-major: no lane slicing).
    q = jnp.einsum('hnd,hde->hne', ln_h, wq_ref[...],
                   preferred_element_type=jnp.float32)      # (H, N, dh)
    k = jnp.einsum('hnd,hde->hne', ln_h, wk_ref[...],
                   preferred_element_type=jnp.float32)
    v = jnp.einsum('hnd,hde->hne', ln_h, wv_ref[...],
                   preferred_element_type=jnp.float32)

    s = jnp.einsum('hie,hje->hij', q, k,
                   preferred_element_type=jnp.float32)      # (H, N, N)
    s = s * (dim_head ** -0.5)
    s = s - jnp.max(s, axis=-1, keepdims=True)
    e = jnp.exp(s)
    # approx reciprocal runs on the otherwise-idle EUP slot (tiny extra error
    # vs the exact PyTorch softmax; acceptable for inference).
    p = e * pl.reciprocal(jnp.sum(e, axis=-1, keepdims=True), approx=True)
    oh = jnp.einsum('hij,hje->hie', p, v,
                    preferred_element_type=jnp.float32)     # (H, N, dh)

    # Output projection:  concat_h(out_h) @ Wout  ==  sum_h out_h @ Wout[h]
    # (head-batched form avoids an in-kernel (N,H,dh)->(N,H*dh) relayout).
    proj = jnp.einsum('hne,hed->hnd', oh, wo_ref[...],
                      preferred_element_type=jnp.float32)   # (H, N, D)
    x = x + jnp.sum(proj, axis=0) + bo_ref[...]

    # ---------- PreNorm + MLP (Linear -> GELU -> Linear) + residual ----------
    ln2 = _layernorm(x, g2_ref[...], be2_ref[...])
    h1 = jnp.dot(ln2, w1_ref[...], preferred_element_type=jnp.float32) + b1_ref[...]
    h1 = _gelu_tanh(h1)
    y = jnp.dot(h1, w2_ref[...], preferred_element_type=jnp.float32) + b2_ref[...]
    x = x + y

    act_ref[...] = x                                        # carry to next layer

    @pl.when(layer == pl.num_programs(1) - 1)
    def _():
        o_ref[...] = x                                      # single HBM store per batch block


def transformer_forward(x, params, heads, dim_head, mlp_dim):
    B, N, D = x.shape
    H, dh = heads, dim_head
    depth = params["wq"].shape[0]

    def wspec(*tail):
        # Per-layer weight: leading depth axis squeezed out, indexed by layer.
        return pl.BlockSpec((None,) + tail, lambda b, l, _t=tail: (l,) + (0,) * len(_t))

    kernel = functools.partial(_transformer_kernel, heads=H, dim_head=dh)
    return pl.pallas_call(
        kernel,
        out_shape=jax.ShapeDtypeStruct((B, N, D), jnp.float32),
        grid=(B, depth),
        in_specs=[
            pl.BlockSpec((None, N, D), lambda b, l: (b, 0, 0)),   # x
            wspec(1, D), wspec(1, D),                             # LN1 gamma, beta
            wspec(H, D, dh), wspec(H, D, dh), wspec(H, D, dh),    # Wq, Wk, Wv (head-major)
            wspec(H, dh, D), wspec(1, D),                         # Wout (head-major), bout
            wspec(1, D), wspec(1, D),                             # LN2 gamma, beta
            wspec(D, mlp_dim), wspec(1, mlp_dim),                 # fc1 W, b
            wspec(mlp_dim, D), wspec(1, D),                       # fc2 W, b
        ],
        out_specs=pl.BlockSpec((None, N, D), lambda b, l: (b, 0, 0)),
        scratch_shapes=[pltpu.VMEM((N, D), jnp.float32)],          # resident activation carry
        compiler_params=pltpu.CompilerParams(
            dimension_semantics=("parallel", "arbitrary")),
        # NOTE: at real ViT sizes on v7x (64 MiB VMEM), tile mlp_dim / use bf16
        # weights and set vmem_limit_bytes here.
    )(x, params["g1"], params["be1"],
      params["wq"], params["wk"], params["wv"], params["wo"], params["bo"],
      params["g2"], params["be2"],
      params["w1"], params["b1"], params["w2"], params["b2"])


# -------------------- parameter init (deterministic, torch-Linear-like) --------------------
def init_params(key, dim, depth, heads, dim_head, mlp_dim):
    inner = heads * dim_head

    def unif(k, shape, fan_in):
        bound = 1.0 / math.sqrt(fan_in)
        return jax.random.uniform(k, shape, jnp.float32, -bound, bound)

    acc = {name: [] for name in
           ("g1", "be1", "wq", "wk", "wv", "wo", "bo", "g2", "be2", "w1", "b1", "w2", "b2")}
    for _ in range(depth):
        key, *ks = jax.random.split(key, 8)
        acc["g1"].append(jnp.ones((1, dim), jnp.float32))
        acc["be1"].append(jnp.zeros((1, dim), jnp.float32))
        # to_qkv: Linear(dim, 3*inner, bias=False); stored transposed (dim, 3*inner)
        wqkv = unif(ks[0], (dim, 3 * inner), dim)
        to_heads = lambda w: jnp.transpose(w.reshape(dim, heads, dim_head), (1, 0, 2))
        acc["wq"].append(to_heads(wqkv[:, 0 * inner:1 * inner]))
        acc["wk"].append(to_heads(wqkv[:, 1 * inner:2 * inner]))
        acc["wv"].append(to_heads(wqkv[:, 2 * inner:3 * inner]))
        # to_out: Linear(inner, dim); stored transposed then head-major (H, dh, dim)
        acc["wo"].append(unif(ks[1], (inner, dim), inner).reshape(heads, dim_head, dim))
        acc["bo"].append(unif(ks[2], (1, dim), inner))
        acc["g2"].append(jnp.ones((1, dim), jnp.float32))
        acc["be2"].append(jnp.zeros((1, dim), jnp.float32))
        acc["w1"].append(unif(ks[3], (dim, mlp_dim), dim))
        acc["b1"].append(unif(ks[4], (1, mlp_dim), dim))
        acc["w2"].append(unif(ks[5], (mlp_dim, dim), mlp_dim))
        acc["b2"].append(unif(ks[6], (1, dim), mlp_dim))
    return {name: jnp.stack(vals, axis=0) for name, vals in acc.items()}


if __name__ == "__main__":
    # Small config: dim=32, depth=2, heads=4, dim_head=16, mlp_dim=64
    B, N, D = 2, 8, 32
    DEPTH, HEADS, DIM_HEAD, MLP_DIM = 2, 4, 16, 64

    key = jax.random.PRNGKey(0)
    kx, kp = jax.random.split(key)
    x = jax.random.normal(kx, (B, N, D), jnp.float32)
    params = init_params(kp, D, DEPTH, HEADS, DIM_HEAD, MLP_DIM)

    out = transformer_forward(x, params, HEADS, DIM_HEAD, MLP_DIM)
    out = jax.block_until_ready(out)
    assert out.shape == (B, N, D)
    assert bool(jnp.all(jnp.isfinite(out)))
    print("KERNEL_OK")
</pallas_src>

<mosaic_0001>
module attributes {stable_mosaic.version = 11 : i64} {
  func.func @_transformer_kernel(%arg0: i32, %arg1: i32, %arg2: memref<1x8x32xf32, #tpu.memory_space<vmem>>, %arg3: memref<1x1x32xf32, #tpu.memory_space<vmem>>, %arg4: memref<1x1x32xf32, #tpu.memory_space<vmem>>, %arg5: memref<1x4x32x16xf32, #tpu.memory_space<vmem>>, %arg6: memref<1x4x32x16xf32, #tpu.memory_space<vmem>>, %arg7: memref<1x4x32x16xf32, #tpu.memory_space<vmem>>, %arg8: memref<1x4x16x32xf32, #tpu.memory_space<vmem>>, %arg9: memref<1x1x32xf32, #tpu.memory_space<vmem>>, %arg10: memref<1x1x32xf32, #tpu.memory_space<vmem>>, %arg11: memref<1x1x32xf32, #tpu.memory_space<vmem>>, %arg12: memref<1x32x64xf32, #tpu.memory_space<vmem>>, %arg13: memref<1x1x64xf32, #tpu.memory_space<vmem>>, %arg14: memref<1x64x32xf32, #tpu.memory_space<vmem>>, %arg15: memref<1x1x32xf32, #tpu.memory_space<vmem>>, %arg16: memref<1x8x32xf32, #tpu.memory_space<vmem>>, %arg17: memref<8x32xf32, #tpu.memory_space<vmem>>) attributes {dimension_semantics = [#tpu.dimension_semantics<parallel>, #tpu.dimension_semantics<arbitrary>], iteration_bounds = array<i64: 2, 2>, scalar_prefetch = 0 : i64, scratch_operands = 1 : i64, tpu.core_type = #tpu.core_type<tc>, window_params = [{transform_indices = @transform_0, window_bounds = array<i64: 1, 8, 32>}, {transform_indices = @transform_1, window_bounds = array<i64: 1, 1, 32>}, {transform_indices = @transform_2, window_bounds = array<i64: 1, 1, 32>}, {transform_indices = @transform_3, window_bounds = array<i64: 1, 4, 32, 16>}, {transform_indices = @transform_4, window_bounds = array<i64: 1, 4, 32, 16>}, {transform_indices = @transform_5, window_bounds = array<i64: 1, 4, 32, 16>}, {transform_indices = @transform_6, window_bounds = array<i64: 1, 4, 16, 32>}, {transform_indices = @transform_7, window_bounds = array<i64: 1, 1, 32>}, {transform_indices = @transform_8, window_bounds = array<i64: 1, 1, 32>}, {transform_indices = @transform_9, window_bounds = array<i64: 1, 1, 32>}, {transform_indices = @transform_10, window_bounds = array<i64: 1, 32, 64>}, {transform_indices = @transform_11, window_bounds = array<i64: 1, 1, 64>}, {transform_indices = @transform_12, window_bounds = array<i64: 1, 64, 32>}, {transform_indices = @transform_13, window_bounds = array<i64: 1, 1, 32>}, {transform_indices = @transform_14, window_bounds = array<i64: 1, 8, 32>}]} {
    %c0_i32 = arith.constant 0 : i32
    %0 = arith.cmpi eq, %arg1, %c0_i32 : i32
    %1 = arith.extui %0 : i1 to i32
    %c0_i32_0 = arith.constant 0 : i32
    %2 = arith.cmpi ne, %1, %c0_i32_0 : i32
    scf.if %2 {
      %c0_73 = arith.constant 0 : index
      %c0_74 = arith.constant 0 : index
      %c0_75 = arith.constant 0 : index
      %122 = vector.load %arg2[%c0_73, %c0_74, %c0_75] : memref<1x8x32xf32, #tpu.memory_space<vmem>>, vector<1x8x32xf32>
      %123 = vector.shape_cast %122 : vector<1x8x32xf32> to vector<8x32xf32>
      %c0_76 = arith.constant 0 : index
      %c0_77 = arith.constant 0 : index
      %124 = vector.load %arg17[%c0_76, %c0_77] : memref<8x32xf32, #tpu.memory_space<vmem>>, vector<8x32xf32>
      tpu.vector_store %arg17[%c0_76, %c0_77], %123 {strides = array<i32>} : memref<8x32xf32, #tpu.memory_space<vmem>>, vector<8x32xf32>,
    } else {
    }
    %c0 = arith.constant 0 : index
    %c0_1 = arith.constant 0 : index
    %3 = vector.load %arg17[%c0, %c0_1] : memref<8x32xf32, #tpu.memory_space<vmem>>, vector<8x32xf32>
    %c0_2 = arith.constant 0 : index
    %c0_3 = arith.constant 0 : index
    %c0_4 = arith.constant 0 : index
    %4 = vector.load %arg3[%c0_2, %c0_3, %c0_4] : memref<1x1x32xf32, #tpu.memory_space<vmem>>, vector<1x1x32xf32>
    %5 = vector.shape_cast %4 : vector<1x1x32xf32> to vector<1x32xf32>
    %c0_5 = arith.constant 0 : index
    %c0_6 = arith.constant 0 : index
    %c0_7 = arith.constant 0 : index
    %6 = vector.load %arg4[%c0_5, %c0_6, %c0_7] : memref<1x1x32xf32, #tpu.memory_space<vmem>>, vector<1x1x32xf32>
    %7 = vector.shape_cast %6 : vector<1x1x32xf32> to vector<1x32xf32>
    %cst = arith.constant dense<0.000000e+00> : vector<8xf32>
    %8 = vector.multi_reduction <add>, %3, %cst [1] : vector<8x32xf32> to vector<8xf32>
    %9 = vector.shape_cast %8 : vector<8xf32> to vector<8x1xf32>
    %cst_8 = arith.constant 3.200000e+01 : f32
    %10 = vector.broadcast %cst_8 : f32 to vector<8x1xf32>
    %11 = arith.divf %9, %10 : vector<8x1xf32>
    %12 = vector.broadcast %11 : vector<8x1xf32> to vector<8x32xf32>
    %13 = arith.subf %3, %12 : vector<8x32xf32>
    %14 = arith.mulf %13, %13 : vector<8x32xf32>
    %cst_9 = arith.constant dense<0.000000e+00> : vector<8xf32>
    %15 = vector.multi_reduction <add>, %14, %cst_9 [1] : vector<8x32xf32> to vector<8xf32>
    %16 = vector.shape_cast %15 : vector<8xf32> to vector<8x1xf32>
    %cst_10 = arith.constant 3.200000e+01 : f32
    %17 = vector.broadcast %cst_10 : f32 to vector<8x1xf32>
    %18 = arith.divf %16, %17 : vector<8x1xf32>
    %cst_11 = arith.constant 9.99999974E-6 : f32
    %19 = vector.broadcast %cst_11 : f32 to vector<8x1xf32>
    %20 = arith.addf %18, %19 : vector<8x1xf32>
    %21 = math.rsqrt %20 : vector<8x1xf32>
    %22 = vector.broadcast %11 : vector<8x1xf32> to vector<8x32xf32>
    %23 = arith.subf %3, %22 : vector<8x32xf32>
    %24 = vector.broadcast %21 : vector<8x1xf32> to vector<8x32xf32>
    %25 = arith.mulf %23, %24 : vector<8x32xf32>
    %26 = vector.broadcast %5 : vector<1x32xf32> to vector<8x32xf32>
    %27 = arith.mulf %25, %26 : vector<8x32xf32>
    %28 = vector.broadcast %7 : vector<1x32xf32> to vector<8x32xf32>
    %29 = arith.addf %27, %28 : vector<8x32xf32>
    %30 = vector.shape_cast %29 : vector<8x32xf32> to vector<1x8x32xf32>
    %31 = vector.broadcast %30 : vector<1x8x32xf32> to vector<4x8x32xf32>
    %c0_12 = arith.constant 0 : index
    %c0_13 = arith.constant 0 : index
    %c0_14 = arith.constant 0 : index
    %c0_15 = arith.constant 0 : index
    %32 = vector.load %arg5[%c0_12, %c0_13, %c0_14, %c0_15] : memref<1x4x32x16xf32, #tpu.memory_space<vmem>>, vector<1x4x32x16xf32>
    %33 = vector.shape_cast %32 : vector<1x4x32x16xf32> to vector<4x32x16xf32>
    "tpu.trace_start"() <{level = 10 : i32, message = "hnd,hde->hne"}> : () -> ()
    %cst_16 = arith.constant dense<0.000000e+00> : vector<4x8x16xf32>
    %34 = tpu.matmul %31, %33, %cst_16 {dimension_numbers = #tpu.dot_dimension_numbers<[2], [1], [1], [2], [0, 0, 0, 1, 1, 2], [0], [0]>} : vector<4x8x32xf32>, vector<4x32x16xf32>, vector<4x8x16xf32> -> vector<4x8x16xf32>
    "tpu.trace_stop"() : () -> ()
    %c0_17 = arith.constant 0 : index
    %c0_18 = arith.constant 0 : index
    %c0_19 = arith.constant 0 : index
    %c0_20 = arith.constant 0 : index
    %35 = vector.load %arg6[%c0_17, %c0_18, %c0_19, %c0_20] : memref<1x4x32x16xf32, #tpu.memory_space<vmem>>, vector<1x4x32x16xf32>
    %36 = vector.shape_cast %35 : vector<1x4x32x16xf32> to vector<4x32x16xf32>
    "tpu.trace_start"() <{level = 10 : i32, message = "hnd,hde->hne"}> : () -> ()
    %cst_21 = arith.constant dense<0.000000e+00> : vector<4x8x16xf32>
    %37 = tpu.matmul %31, %36, %cst_21 {dimension_numbers = #tpu.dot_dimension_numbers<[2], [1], [1], [2], [0, 0, 0, 1, 1, 2], [0], [0]>} : vector<4x8x32xf32>, vector<4x32x16xf32>, vector<4x8x16xf32> -> vector<4x8x16xf32>
    "tpu.trace_stop"() : () -> ()
    %c0_22 = arith.constant 0 : index
    %c0_23 = arith.constant 0 : index
    %c0_24 = arith.constant 0 : index
    %c0_25 = arith.constant 0 : index
    %38 = vector.load %arg7[%c0_22, %c0_23, %c0_24, %c0_25] : memref<1x4x32x16xf32, #tpu.memory_space<vmem>>, vector<1x4x32x16xf32>
    %39 = vector.shape_cast %38 : vector<1x4x32x16xf32> to vector<4x32x16xf32>
    "tpu.trace_start"() <{level = 10 : i32, message = "hnd,hde->hne"}> : () -> ()
    %cst_26 = arith.constant dense<0.000000e+00> : vector<4x8x16xf32>
    %40 = tpu.matmul %31, %39, %cst_26 {dimension_numbers = #tpu.dot_dimension_numbers<[2], [1], [1], [2], [0, 0, 0, 1, 1, 2], [0], [0]>} : vector<4x8x32xf32>, vector<4x32x16xf32>, vector<4x8x16xf32> -> vector<4x8x16xf32>
    "tpu.trace_stop"() : () -> ()
    "tpu.trace_start"() <{level = 10 : i32, message = "hie,hje->hij"}> : () -> ()
    %cst_27 = arith.constant dense<0.000000e+00> : vector<4x8x8xf32>
    %41 = tpu.matmul %34, %37, %cst_27 {dimension_numbers = #tpu.dot_dimension_numbers<[2], [2], [1], [1], [0, 0, 0, 1, 1, 1], [0], [0]>} : vector<4x8x16xf32>, vector<4x8x16xf32>, vector<4x8x8xf32> -> vector<4x8x8xf32>
    "tpu.trace_stop"() : () -> ()
    %cst_28 = arith.constant 2.500000e-01 : f32
    %42 = vector.broadcast %cst_28 : f32 to vector<4x8x8xf32>
    %43 = arith.mulf %41, %42 : vector<4x8x8xf32>
    %cst_29 = arith.constant dense<0xFF800000> : vector<4x8xf32>
    %44 = vector.multi_reduction <maximumf>, %43, %cst_29 [2] : vector<4x8x8xf32> to vector<4x8xf32>
    %45 = vector.shape_cast %44 : vector<4x8xf32> to vector<4x8x1xf32>
    %46 = vector.broadcast %45 : vector<4x8x1xf32> to vector<4x8x8xf32>
    %47 = arith.subf %43, %46 : vector<4x8x8xf32>
    %48 = math.exp %47 : vector<4x8x8xf32>
    %cst_30 = arith.constant dense<0.000000e+00> : vector<4x8xf32>
    %49 = vector.multi_reduction <add>, %48, %cst_30 [2] : vector<4x8x8xf32> to vector<4x8xf32>
    %50 = vector.shape_cast %49 : vector<4x8xf32> to vector<4x8x1xf32>
    %51 = tpu.reciprocal %50 {approx = true} : vector<4x8x1xf32> -> vector<4x8x1xf32>
    %52 = vector.broadcast %51 : vector<4x8x1xf32> to vector<4x8x8xf32>
    %53 = arith.mulf %48, %52 : vector<4x8x8xf32>
    "tpu.trace_start"() <{level = 10 : i32, message = "hij,hje->hie"}> : () -> ()
    %cst_31 = arith.constant dense<0.000000e+00> : vector<4x8x16xf32>
    %54 = tpu.matmul %53, %40, %cst_31 {dimension_numbers = #tpu.dot_dimension_numbers<[2], [1], [1], [2], [0, 0, 0, 1, 1, 2], [0], [0]>} : vector<4x8x8xf32>, vector<4x8x16xf32>, vector<4x8x16xf32> -> vector<4x8x16xf32>
    "tpu.trace_stop"() : () -> ()
    %c0_32 = arith.constant 0 : index
    %c0_33 = arith.constant 0 : index
    %c0_34 = arith.constant 0 : index
    %c0_35 = arith.constant 0 : index
    %55 = vector.load %arg8[%c0_32, %c0_33, %c0_34, %c0_35] : memref<1x4x16x32xf32, #tpu.memory_space<vmem>>, vector<1x4x16x32xf32>
    %56 = vector.shape_cast %55 : vector<1x4x16x32xf32> to vector<4x16x32xf32>
    "tpu.trace_start"() <{level = 10 : i32, message = "hne,hed->hnd"}> : () -> ()
    %cst_36 = arith.constant dense<0.000000e+00> : vector<4x8x32xf32>
    %57 = tpu.matmul %54, %56, %cst_36 {dimension_numbers = #tpu.dot_dimension_numbers<[2], [1], [1], [2], [0, 0, 0, 1, 1, 2], [0], [0]>} : vector<4x8x16xf32>, vector<4x16x32xf32>, vector<4x8x32xf32> -> vector<4x8x32xf32>
    "tpu.trace_stop"() : () -> ()
    %cst_37 = arith.constant dense<0.000000e+00> : vector<8x32xf32>
    %58 = vector.multi_reduction <add>, %57, %cst_37 [0] : vector<4x8x32xf32> to vector<8x32xf32>
    %59 = arith.addf %3, %58 : vector<8x32xf32>
    %c0_38 = arith.constant 0 : index
    %c0_39 = arith.constant 0 : index
    %c0_40 = arith.constant 0 : index
    %60 = vector.load %arg9[%c0_38, %c0_39, %c0_40] : memref<1x1x32xf32, #tpu.memory_space<vmem>>, vector<1x1x32xf32>
    %61 = vector.shape_cast %60 : vector<1x1x32xf32> to vector<1x32xf32>
    %62 = vector.broadcast %61 : vector<1x32xf32> to vector<8x32xf32>
    %63 = arith.addf %59, %62 : vector<8x32xf32>
    %c0_41 = arith.constant 0 : index
    %c0_42 = arith.constant 0 : index
    %c0_43 = arith.constant 0 : index
    %64 = vector.load %arg10[%c0_41, %c0_42, %c0_43] : memref<1x1x32xf32, #tpu.memory_space<vmem>>, vector<1x1x32xf32>
    %65 = vector.shape_cast %64 : vector<1x1x32xf32> to vector<1x32xf32>
    %c0_44 = arith.constant 0 : index
    %c0_45 = arith.constant 0 : index
    %c0_46 = arith.constant 0 : index
    %66 = vector.load %arg11[%c0_44, %c0_45, %c0_46] : memref<1x1x32xf32, #tpu.memory_space<vmem>>, vector<1x1x32xf32>
    %67 = vector.shape_cast %66 : vector<1x1x32xf32> to vector<1x32xf32>
    %cst_47 = arith.constant dense<0.000000e+00> : vector<8xf32>
    %68 = vector.multi_reduction <add>, %63, %cst_47 [1] : vector<8x32xf32> to vector<8xf32>
    %69 = vector.shape_cast %68 : vector<8xf32> to vector<8x1xf32>
    %cst_48 = arith.constant 3.200000e+01 : f32
    %70 = vector.broadcast %cst_48 : f32 to vector<8x1xf32>
    %71 = arith.divf %69, %70 : vector<8x1xf32>
    %72 = vector.broadcast %71 : vector<8x1xf32> to vector<8x32xf32>
    %73 = arith.subf %63, %72 : vector<8x32xf32>
    %74 = arith.mulf %73, %73 : vector<8x32xf32>
    %cst_49 = arith.constant dense<0.000000e+00> : vector<8xf32>
    %75 = vector.multi_reduction <add>, %74, %cst_49 [1] : vector<8x32xf32> to vector<8xf32>
    %76 = vector.shape_cast %75 : vector<8xf32> to vector<8x1xf32>
    %cst_50 = arith.constant 3.200000e+01 : f32
    %77 = vector.broadcast %cst_50 : f32 to vector<8x1xf32>
    %78 = arith.divf %76, %77 : vector<8x1xf32>
    %cst_51 = arith.constant 9.99999974E-6 : f32
    %79 = vector.broadcast %cst_51 : f32 to vector<8x1xf32>
    %80 = arith.addf %78, %79 : vector<8x1xf32>
    %81 = math.rsqrt %80 : vector<8x1xf32>
    %82 = vector.broadcast %71 : vector<8x1xf32> to vector<8x32xf32>
    %83 = arith.subf %63, %82 : vector<8x32xf32>
    %84 = vector.broadcast %81 : vector<8x1xf32> to vector<8x32xf32>
    %85 = arith.mulf %83, %84 : vector<8x32xf32>
    %86 = vector.broadcast %65 : vector<1x32xf32> to vector<8x32xf32>
    %87 = arith.mulf %85, %86 : vector<8x32xf32>
    %88 = vector.broadcast %67 : vector<1x32xf32> to vector<8x32xf32>
    %89 = arith.addf %87, %88 : vector<8x32xf32>
    %c0_52 = arith.constant 0 : index
    %c0_53 = arith.constant 0 : index
    %c0_54 = arith.constant 0 : index
    %90 = vector.load %arg12[%c0_52, %c0_53, %c0_54] : memref<1x32x64xf32, #tpu.memory_space<vmem>>, vector<1x32x64xf32>
    %91 = vector.shape_cast %90 : vector<1x32x64xf32> to vector<32x64xf32>
    %cst_55 = arith.constant dense<0.000000e+00> : vector<8x64xf32>
    %92 = tpu.matmul %89, %91, %cst_55 {dimension_numbers = #tpu.dot_dimension_numbers<[1], [0], [0], [1], [0, 0, 1, 1], [], []>} : vector<8x32xf32>, vector<32x64xf32>, vector<8x64xf32> -> vector<8x64xf32>
    %c0_56 = arith.constant 0 : index
    %c0_57 = arith.constant 0 : index
    %c0_58 = arith.constant 0 : index
    %93 = vector.load %arg13[%c0_56, %c0_57, %c0_58] : memref<1x1x64xf32, #tpu.memory_space<vmem>>, vector<1x1x64xf32>
    %94 = vector.shape_cast %93 : vector<1x1x64xf32> to vector<1x64xf32>
    %95 = vector.broadcast %94 : vector<1x64xf32> to vector<8x64xf32>
    %96 = arith.addf %92, %95 : vector<8x64xf32>
    %cst_59 = arith.constant 5.000000e-01 : f32
    %97 = vector.broadcast %cst_59 : f32 to vector<8x64xf32>
    %98 = arith.mulf %97, %96 : vector<8x64xf32>
    %cst_60 = arith.constant 4.471500e-02 : f32
    %99 = vector.broadcast %cst_60 : f32 to vector<8x64xf32>
    %100 = arith.mulf %99, %96 : vector<8x64xf32>
    %101 = arith.mulf %100, %96 : vector<8x64xf32>
    %102 = arith.mulf %101, %96 : vector<8x64xf32>
    %103 = arith.addf %96, %102 : vector<8x64xf32>
    %cst_61 = arith.constant 0.797884583 : f32
    %104 = vector.broadcast %cst_61 : f32 to vector<8x64xf32>
    %105 = arith.mulf %104, %103 : vector<8x64xf32>
    %106 = math.tanh %105 : vector<8x64xf32>
    %cst_62 = arith.constant 1.000000e+00 : f32
    %107 = vector.broadcast %cst_62 : f32 to vector<8x64xf32>
    %108 = arith.addf %107, %106 : vector<8x64xf32>
    %109 = arith.mulf %98, %108 : vector<8x64xf32>
    %c0_63 = arith.constant 0 : index
    %c0_64 = arith.constant 0 : index
    %c0_65 = arith.constant 0 : index
    %110 = vector.load %arg14[%c0_63, %c0_64, %c0_65] : memref<1x64x32xf32, #tpu.memory_space<vmem>>, vector<1x64x32xf32>
    %111 = vector.shape_cast %110 : vector<1x64x32xf32> to vector<64x32xf32>
    %cst_66 = arith.constant dense<0.000000e+00> : vector<8x32xf32>
    %112 = tpu.matmul %109, %111, %cst_66 {dimension_numbers = #tpu.dot_dimension_numbers<[1], [0], [0], [1], [0, 0, 1, 1], [], []>} : vector<8x64xf32>, vector<64x32xf32>, vector<8x32xf32> -> vector<8x32xf32>
    %c0_67 = arith.constant 0 : index
    %c0_68 = arith.constant 0 : index
    %c0_69 = arith.constant 0 : index
    %113 = vector.load %arg15[%c0_67, %c0_68, %c0_69] : memref<1x1x32xf32, #tpu.memory_space<vmem>>, vector<1x1x32xf32>
    %114 = vector.shape_cast %113 : vector<1x1x32xf32> to vector<1x32xf32>
    %115 = vector.broadcast %114 : vector<1x32xf32> to vector<8x32xf32>
    %116 = arith.addf %112, %115 : vector<8x32xf32>
    %117 = arith.addf %63, %116 : vector<8x32xf32>
    %c0_70 = arith.constant 0 : index
    %c0_71 = arith.constant 0 : index
    %118 = vector.load %arg17[%c0_70, %c0_71] : memref<8x32xf32, #tpu.memory_space<vmem>>, vector<8x32xf32>
    tpu.vector_store %arg17[%c0_70, %c0_71], %117 {strides = array<i32>} : memref<8x32xf32, #tpu.memory_space<vmem>>, vector<8x32xf32>,
    %c1_i32 = arith.constant 1 : i32
    %119 = arith.cmpi eq, %arg1, %c1_i32 : i32
    %120 = arith.extui %119 : i1 to i32
    %c0_i32_72 = arith.constant 0 : i32
    %121 = arith.cmpi ne, %120, %c0_i32_72 : i32
    scf.if %121 {
      %c0_73 = arith.constant 0 : index
      %c0_74 = arith.constant 0 : index
      %c0_75 = arith.constant 0 : index
      %122 = vector.load %arg16[%c0_73, %c0_74, %c0_75] : memref<1x8x32xf32, #tpu.memory_space<vmem>>, vector<1x8x32xf32>
      %123 = vector.shape_cast %122 : vector<1x8x32xf32> to vector<8x32xf32>
      %124 = vector.shape_cast %117 : vector<8x32xf32> to vector<1x8x32xf32>
      tpu.vector_store %arg16[%c0_73, %c0_74, %c0_75], %124 {strides = array<i32>} : memref<1x8x32xf32, #tpu.memory_space<vmem>>, vector<1x8x32xf32>,
    } else {
    }
    return
  }
  func.func @transform_0(%arg0: i32, %arg1: i32) -> (i32, i32, i32) {
    %c0_i32 = arith.constant 0 : i32
    %c0_i32_0 = arith.constant 0 : i32
    %c0_i32_1 = arith.constant 0 : i32
    return %arg0, %c0_i32, %c0_i32_0 : i32, i32, i32
  }
  func.func @transform_1(%arg0: i32, %arg1: i32) -> (i32, i32, i32) {
    %c0_i32 = arith.constant 0 : i32
    %c0_i32_0 = arith.constant 0 : i32
    %c0_i32_1 = arith.constant 0 : i32
    return %arg1, %c0_i32, %c0_i32_0 : i32, i32, i32
  }
  func.func @transform_2(%arg0: i32, %arg1: i32) -> (i32, i32, i32) {
    %c0_i32 = arith.constant 0 : i32
    %c0_i32_0 = arith.constant 0 : i32
    %c0_i32_1 = arith.constant 0 : i32
    return %arg1, %c0_i32, %c0_i32_0 : i32, i32, i32
  }
  func.func @transform_3(%arg0: i32, %arg1: i32) -> (i32, i32, i32, i32) {
    %c0_i32 = arith.constant 0 : i32
    %c0_i32_0 = arith.constant 0 : i32
    %c0_i32_1 = arith.constant 0 : i32
    %c0_i32_2 = arith.constant 0 : i32
    return %arg1, %c0_i32, %c0_i32_0, %c0_i32_1 : i32, i32, i32, i32
  }
  func.func @transform_4(%arg0: i32, %arg1: i32) -> (i32, i32, i32, i32) {
    %c0_i32 = arith.constant 0 : i32
    %c0_i32_0 = arith.constant 0 : i32
    %c0_i32_1 = arith.constant 0 : i32
    %c0_i32_2 = arith.constant 0 : i32
    return %arg1, %c0_i32, %c0_i32_0, %c0_i32_1 : i32, i32, i32, i32
  }
  func.func @transform_5(%arg0: i32, %arg1: i32) -> (i32, i32, i32, i32) {
    %c0_i32 = arith.constant 0 : i32
    %c0_i32_0 = arith.constant 0 : i32
    %c0_i32_1 = arith.constant 0 : i32
    %c0_i32_2 = arith.constant 0 : i32
    return %arg1, %c0_i32, %c0_i32_0, %c0_i32_1 : i32, i32, i32, i32
  }
  func.func @transform_6(%arg0: i32, %arg1: i32) -> (i32, i32, i32, i32) {
    %c0_i32 = arith.constant 0 : i32
    %c0_i32_0 = arith.constant 0 : i32
    %c0_i32_1 = arith.constant 0 : i32
    %c0_i32_2 = arith.constant 0 : i32
    return %arg1, %c0_i32, %c0_i32_0, %c0_i32_1 : i32, i32, i32, i32
  }
  func.func @transform_7(%arg0: i32, %arg1: i32) -> (i32, i32, i32) {
    %c0_i32 = arith.constant 0 : i32
    %c0_i32_0 = arith.constant 0 : i32
    %c0_i32_1 = arith.constant 0 : i32
    return %arg1, %c0_i32, %c0_i32_0 : i32, i32, i32
  }
  func.func @transform_8(%arg0: i32, %arg1: i32) -> (i32, i32, i32) {
    %c0_i32 = arith.constant 0 : i32
    %c0_i32_0 = arith.constant 0 : i32
    %c0_i32_1 = arith.constant 0 : i32
    return %arg1, %c0_i32, %c0_i32_0 : i32, i32, i32
  }
  func.func @transform_9(%arg0: i32, %arg1: i32) -> (i32, i32, i32) {
    %c0_i32 = arith.constant 0 : i32
    %c0_i32_0 = arith.constant 0 : i32
    %c0_i32_1 = arith.constant 0 : i32
    return %arg1, %c0_i32, %c0_i32_0 : i32, i32, i32
  }
  func.func @transform_10(%arg0: i32, %arg1: i32) -> (i32, i32, i32) {
    %c0_i32 = arith.constant 0 : i32
    %c0_i32_0 = arith.constant 0 : i32
    %c0_i32_1 = arith.constant 0 : i32
    return %arg1, %c0_i32, %c0_i32_0 : i32, i32, i32
  }
  func.func @transform_11(%arg0: i32, %arg1: i32) -> (i32, i32, i32) {
    %c0_i32 = arith.constant 0 : i32
    %c0_i32_0 = arith.constant 0 : i32
    %c0_i32_1 = arith.constant 0 : i32
    return %arg1, %c0_i32, %c0_i32_0 : i32, i32, i32
  }
  func.func @transform_12(%arg0: i32, %arg1: i32) -> (i32, i32, i32) {
    %c0_i32 = arith.constant 0 : i32
    %c0_i32_0 = arith.constant 0 : i32
    %c0_i32_1 = arith.constant 0 : i32
    return %arg1, %c0_i32, %c0_i32_0 : i32, i32, i32
  }
  func.func @transform_13(%arg0: i32, %arg1: i32) -> (i32, i32, i32) {
    %c0_i32 = arith.constant 0 : i32
    %c0_i32_0 = arith.constant 0 : i32
    %c0_i32_1 = arith.constant 0 : i32
    return %arg1, %c0_i32, %c0_i32_0 : i32, i32, i32
  }
  func.func @transform_14(%arg0: i32, %arg1: i32) -> (i32, i32, i32) {
    %c0_i32 = arith.constant 0 : i32
    %c0_i32_0 = arith.constant 0 : i32
    %c0_i32_1 = arith.constant 0 : i32
    return %arg0, %c0_i32, %c0_i32_0 : i32, i32, i32
  }
}

</mosaic_0001>

<bundles_post_ra>
// kernel: tpu_custom_call.1
= control target key start
LH: loop header
LB: loop body
LE: loop exit
PB: predicated region body
PF: predicated region fallthrough
CT: control target
= control target key end

     0   :  { %s2429_s0 = inlined_call_operand.vmem [shape: f32[2,8,32], index: 0, kind: input, shape index: {}]   ;;  %s2430_s1 = inlined_call_operand.vmem [shape: f32[2,1,32], index: 1, kind: input, shape index: {}]   ;;  %s2431_s2 = inlined_call_operand.vmem [shape: f32[2,1,32], index: 2, kind: input, shape index: {}]   ;;  %s2432_s3 = inlined_call_operand.vmem [shape: f32[2,4,32,16], index: 3, kind: input, shape index: {}]   ;;  %s2433_s4 = inlined_call_operand.vmem [shape: f32[2,4,32,16], index: 4, kind: input, shape index: {}]   ;;  %s2434_s5 = inlined_call_operand.vmem [shape: f32[2,4,32,16], index: 5, kind: input, shape index: {}]   ;;  %s2435_s6 = inlined_call_operand.vmem [shape: f32[2,4,16,32], index: 6, kind: input, shape index: {}]   ;;  %s2436_s7 = inlined_call_operand.vmem [shape: f32[2,1,32], index: 7, kind: input, shape index: {}]   ;;  %s2437_s8 = inlined_call_operand.vmem [shape: f32[2,1,32], index: 8, kind: input, shape index: {}]   ;;  %s2438_s9 = inlined_call_operand.vmem [shape: f32[2,1,32], index: 9, kind: input, shape index: {}]   ;;  %s2439_s10 = inlined_call_operand.vmem [shape: f32[2,32,64], index: 10, kind: input, shape index: {}]   ;;  %s2440_s11 = inlined_call_operand.vmem [shape: f32[2,1,64], index: 11, kind: input, shape index: {}]   ;;  %s2441_s12 = inlined_call_operand.vmem [shape: f32[2,64,32], index: 12, kind: input, shape index: {}]   ;;  %s2442_s13 = inlined_call_operand.vmem [shape: f32[2,1,32], index: 13, kind: input, shape index: {}]   ;;  %s2443_s14 = inlined_call_operand.hbm [shape: f32[2,8,32], index: 14, kind: output, shape index: {}]  }
   0x1   :  { %2459 = sst [smem:[#allocation19_spill]] %s2429_s0 }
   0x2   :  { %2460 = sst [smem:[#allocation20_spill]] %s2431_s2 }
   0x3   :  { %2461 = sst [smem:[#allocation21_spill]] %s2432_s3 }
   0x4   :  { %2462 = sst [smem:[#allocation22_spill]] %s2433_s4 }
   0x5   :  { %2463 = sst [smem:[#allocation23_spill]] %s2434_s5 }
   0x6   :  { %2464 = sst [smem:[#allocation24_spill]] %s2435_s6 }
   0x7   :  { %2465 = sst [smem:[#allocation25_spill]] %s2442_s13 }
   0x8   :  { %2466 = sst [smem:[#allocation26_spill]] %s2443_s14 }
   0x9   :  { %19 = vsyncpa [#allocation4], 0 }
   0xa   :  { %21 = vsyncpa [#allocation4 + $0x1], 0  ;;  %s2063_s29 = smov 0   ;;  %s2065_s30 = smov 0  }
   0xb   :  { %s2067_s15 = smov 0   ;;  %s2069_s16 = smov 0  }
   0xc   :  { %s2071_s17 = smov 0   ;;  %s2073_s18 = smov 0  }
   0xd   :  { %s2075_s19 = smov 0   ;;  %s2077_s20 = smov 0  }
   0xe LB: > { %2467 = sst [smem:[#allocation6_spill]] %s1957_s29  ;;  %s1727_s21 = sadd.s32 4294967295, %s1985_s20   ;;  %s1985_s20 = sphi %s2077_s20, %s27_s20   ;;  %s1981_s19 = sphi %s2075_s19, %s2512_s19   ;;  %s1977_s18 = sphi %s2073_s18, %s2511_s18   ;;  %s1973_s17 = sphi %s2071_s17, %s2510_s17   ;;  %s1969_s16 = sphi %s2069_s16, %s2509_s16   ;;  %s1965_s15 = sphi %s2067_s15, %s2508_s15   ;;  %s1961_s30 = sphi %s2065_s30, %s2507_s30   ;;  %s1957_s29 = sphi %s2063_s29, %s2506_s29  }
   0xf   : > { %2468 = sst [smem:[#allocation7_spill]] %s1961_s30  ;;  %s1728_s22 = sadd.s32 4294967294, %s1985_s20  }
  0x10   : > { %2469 = sst [smem:[#allocation8_spill]] %s1965_s15  ;;  %s36_s23 = sadd.s32 1, %s1977_s18 }
  0x11   : > { %2470 = sst [smem:[#allocation9_spill]] %s1969_s16  ;;  %p37_p0 = scmp.ge.s32.totalorder %s36_s23, 2 }
  0x12   : > { %2471 = sst [smem:[#allocation10_spill]] %s1973_s17  ;;  %s39_s24 = sadd.s32 1, %s1981_s19 }
  0x13   : > { %2472 = sst [smem:[#allocation11_spill]] %s1977_s18  ;;  %p420_p1 = scmp.ne.s32.totalorder %s1965_s15, %s1961_s30 }
  0x14   : > { %2473 = sst [smem:[#allocation12_spill]] %s1981_s19  ;;  %p421_p2 = scmp.eq.s32.totalorder %s1727_s21, 3 }
  0x15   : > { %2474 = sst [smem:[#allocation13_spill]] %s1985_s20  ;;  %s2514_s23 = smov (%p37_p0, %s36_s23), 0 }
  0x16   : > { %2475 = sst [smem:[#allocation14_spill]] %s2514_s23  ;;  %s2516_s24 = smov (!%p37_p0, %s39_s24), %s1981_s19 }
  0x17   : > { %p2112_p3 = por %p421_p2, %p420_p1  ;;  %p426_p4 = scmp.ne.s32.totalorder %s1961_s30, %s1957_s29 }
  0x18   : > { %p41_p5 = scmp.ge.s32.totalorder %s2516_s24, 2  ;;  %p427_p6 = scmp.eq.s32.totalorder %s1728_s22, 3 }
  0x19   : > { %s2476_s25 = scalar_select %p2112_p3, 1, 0 }
  0x1a   : > { %p1731_p7 = scmp.ge.s32.totalorder %s1985_s20, 1  ;;  %p542_p8 = scmp.lt.s32.totalorder %s1985_s20, 5 }
  0x1b   : > { %2477 = sst [smem:[#allocation15_spill]] %s2476_s25  ;;  %s2518_s24 = smov (%p41_p5, %s2516_s24), 0 }
  0x1c   : > { %2478 = sst [smem:[#allocation16_spill]] %s2518_s24  ;;  %p2122_p9 = por %p427_p6, %p426_p4 }
  0x1d   : > { %p543_p10 = pnand %p1731_p7, %p542_p8  ;;  %s407_s27 = ssub.s32 %s1981_s19, %s2518_s24 }
  0x1e   : > { %s2479_s26 = scalar_select %p2122_p9, 1, 0 }
  0x1f   : > { %s410_s28 = sadd.s32 1, %s1965_s15  ;;  %p408_p11 = scmp.eq.s32.totalorder %s407_s27, 0 }
  0x20   : > { %2480 = sst [smem:[#allocation17_spill]] %s2479_s26  ;;  %546 = sbr.rel (%p543_p10) target bundleno = 1725 (0x6bd), region = 76 }
  0x21   : > { %s2130_s21 = scalar_select %p408_p11, %s1965_s15, %s410_s28  }
  0x22   : > { %s2448_s22 = sand.u32 (!%p543_p10), 1, %s1961_s30   ;;  %p638_p12 = scmp.lt.s32.totalorder (!%p543_p10), %s1973_s17, 1 }
  0x23   : > { %2481 = sst [smem:[#allocation18_spill]] %s2130_s21  ;;  %s2136_s23 = sshll.u32 (!%p543_p10), %s2448_s22, 3 }
  0x24   : > { %p642_p13 = scmp.lt.s32.totalorder (!%p543_p10), %s1969_s16, 1  ;;  %s2482_s0 = sld [smem:[#allocation19_spill]] (!%p543_p10) }
  0x25   : > { %s639_s18 = scalar_select %p638_p12, %s1973_s17, 1 }
  0x26   : > { %s2141_s26 = scalar_select %p642_p13, %s1969_s16, 1 }
  0x27   : > { %s1733_s27 = sshll.u32 %s639_s18, 3  ;;  %s2484_s3 = sld [smem:[#allocation21_spill]] }
  0x28   : > { %s1782_s25 = sshll.u32 %s2141_s26, 7  ;;  %s2485_s4 = sld [smem:[#allocation22_spill]] }
  0x29   : > { %s2486_s5 = sld [smem:[#allocation23_spill]]  ;;  %s1785_s28 = sshll.u32 %s2141_s26, 6 }
  0x2a   : > { %s641_s19 = scalar_lea.vmem %s2482_s0, %s1733_s27  ;;  %s2487_s6 = sld [smem:[#allocation24_spill]] }
  0x2b   : > { %s684_s2 = scalar_lea.vmem %s2440_s11, %s2141_s26  ;;  %s2201_s17 = scalar_lea.vmem %s2441_s12, %s1785_s28 }
  0x2c   : > { %s2488_s13 = sld [smem:[#allocation25_spill]]  ;;  %s637_s18 = scalar_lea.vmem [#allocation3], %s2136_s23 }
  0x2d   : > { %s2158_s16 = scalar_lea.vmem %s2484_s3, %s1782_s25  ;;  %s2489_s27 = sld [smem:[#allocation9_spill]] }
  0x2e   : > { %s2163_s24 = scalar_lea.vmem %s2485_s4, %s1782_s25 }
  0x2f   : > { %s2168_s22 = scalar_lea.vmem %s2486_s5, %s1782_s25  ;;  %s1786_s25 = sshll.u32 %s2141_s26, 5 }
  0x30   : > { %s2174_s14 = scalar_lea.vmem %s2487_s6, %s1785_s28  ;;  %s2196_s6 = scalar_lea.vmem %s2439_s10, %s1786_s25 }
  0x32   : > { %s692_s4 = scalar_lea.vmem %s2488_s13, %s2141_s26 }
  0x33   : > { %p1746_p0 = scmp.ne.s32.totalorder %s2489_s27, 0 }
  0x35   : > { %696 = sbr.rel (%p1746_p0) target bundleno = 60 (0x3c), region = 80 }
  0x3a   : > { %v697_v0 = vld [vmem:[%s641_s19] sm:$0xff]  ;;  %vm698_vm0 = vcmask 261120  }
  0x3b   : > { %699 = vst.msk [vmem:[#allocation2] sm:$0xff] %vm698_vm0, %v697_v0 }
  0x3c PF: > { %vm703_vm1 = vcmask 261120   ;;  %v1987_v3 = vmov 32.0   ;;  %v744_v15 = vld [vmem:[%s2158_s16 + $0x18] sm:$0xff]  ;;  %v743_v19 = vld [vmem:[%s2158_s16 + $0x10] sm:$0xff]  ;;  %v742_v23 = vld [vmem:[%s2158_s16 + $0x8] sm:$0xff]  ;;  %s2490_s19 = scalar_lea.vmem %s2430_s1, %s2141_s26  ;;  %s2491_s27 = sld [smem:[#allocation20_spill]] }
  0x3d   : > { %1867 = vrcp.f32 %v1987_v3  ;;  %v748_v16 = vld [vmem:[%s2158_s16 + $0x38] sm:$0xff]  ;;  %772 = vmatpush.msra.mxu0 %v744_v15  ;;  %v747_v20 = vld [vmem:[%s2158_s16 + $0x30] sm:$0xff]  ;;  %v746_v24 = vld [vmem:[%s2158_s16 + $0x28] sm:$0xff]  ;;  %vm1032_vm6 = vcmask 130048   ;;  %vm1141_vm7 = vcmask 64512   ;;  %s2494_s29 = scalar_lea.vmem %s2437_s8, %s2141_s26  ;;  %s2495_s30 = scalar_lea.vmem %s2438_s9, %s2141_s26  ;;  %vm1475_vm11 = vcmask 523264  }
  0x3e   : > { %v756_v17 = vld [vmem:[%s2158_s16 + $0x78] sm:$0xff]  ;;  %792 = vmatpush.msra.mxu2 %v748_v16  ;;  %v755_v21 = vld [vmem:[%s2158_s16 + $0x70] sm:$0xff]  ;;  %v754_v25 = vld [vmem:[%s2158_s16 + $0x68] sm:$0xff] }
  0x3f   : > { %v847_v18 = vld [vmem:[%s2163_s24 + $0x38] sm:$0xff]  ;;  %832 = vmatpush.msra.mxu3 %v756_v17  ;;  %773 = vmatpush.msra.mxu0 %v743_v19  ;;  %v846_v22 = vld [vmem:[%s2163_s24 + $0x30] sm:$0xff]  ;;  %v845_v26 = vld [vmem:[%s2163_s24 + $0x28] sm:$0xff] }
  0x40   : > { %888 = vmatpush.msra.mxu1 %v847_v18  ;;  %793 = vmatpush.msra.mxu2 %v747_v20  ;;  %v741_v27 = vld [vmem:[%s2158_s16] sm:$0xff]  ;;  %v752_v31 = vld [vmem:[%s2158_s16 + $0x58] sm:$0xff]  ;;  %v751_v35 = vld [vmem:[%s2158_s16 + $0x50] sm:$0xff] }
  0x41   : > { %833 = vmatpush.msra.mxu3 %v755_v21  ;;  %774 = vmatpush.msra.mxu0 %v742_v23  ;;  %v745_v28 = vld [vmem:[%s2158_s16 + $0x20] sm:$0xff]  ;;  %v843_v32 = vld [vmem:[%s2163_s24 + $0x18] sm:$0xff]  ;;  %v842_v36 = vld [vmem:[%s2163_s24 + $0x10] sm:$0xff] }
  0x42   : > { %v2209_v1 = vld [vmem:[#allocation2] sm:$0xff]  ;;  %889 = vmatpush.msra.mxu1 %v846_v22  ;;  %794 = vmatpush.msra.mxu2 %v746_v24  ;;  %v855_v33 = vld [vmem:[%s2163_s24 + $0x78] sm:$0xff]  ;;  %v854_v38 = vld [vmem:[%s2163_s24 + $0x70] sm:$0xff]  ;;  %s2492_s25 = scalar_lea.vmem %s2491_s27, %s2141_s26 }
  0x43   : > { %v704_v2 = vsel %vm703_vm1, %v2209_v1, 0.0  ;;  %v1868_v4 = vpop.eup %1867  ;;  %834 = vmatpush.msra.mxu3 %v754_v25  ;;  %v753_v29 = vld [vmem:[%s2158_s16 + $0x60] sm:$0xff]  ;;  %775 = vmatpush.msra.mxu0 %v741_v27  ;;  %v943_v34 = vld [vmem:[%s2168_s22 + $0x38] sm:$0xff]  ;;  %v942_v39 = vld [vmem:[%s2168_s22 + $0x30] sm:$0xff] }
  0x44   : > { %705 = vadd.xlane.f32.xlu0 %v704_v2  ;;  %v708_v5 = vmul.f32 32.0, %v1868_v4  ;;  %vm712_vm2 = vweird.f32 %v1868_v4  ;;  %890 = vmatpush.msra.mxu1 %v845_v26  ;;  %v844_v30 = vld [vmem:[%s2163_s24 + $0x20] sm:$0xff]  ;;  %v750_v40 = vld [vmem:[%s2158_s16 + $0x48] sm:$0xff]  ;;  %v851_v62 = vld [vmem:[%s2163_s24 + $0x58] sm:$0xff] }
  0x45   : > { %795 = vmatpush.msra.mxu2 %v745_v28  ;;  %835 = vmatpush.msra.mxu3 %v753_v29  ;;  %v841_v42 = vld [vmem:[%s2163_s24 + $0x8] sm:$0xff]  ;;  %v749_v45 = vld [vmem:[%s2158_s16 + $0x40] sm:$0xff]  ;;  %v939_v63 = vld [vmem:[%s2168_s22 + $0x18] sm:$0xff] }
  0x46   : > { %v709_v6 = vsub.f32 1.0, %v708_v5  ;;  %891 = vmatpush.msra.mxu1 %v844_v30  ;;  %868 = vmatpush.msrb.mxu0 %v843_v32  ;;  %v853_v43 = vld [vmem:[%s2163_s24 + $0x68] sm:$0xff]  ;;  %v840_v46 = vld [vmem:[%s2163_s24] sm:$0xff]  ;;  %v951_v0 = vld [vmem:[%s2168_s22 + $0x78] sm:$0xff] }
  0x47   : > { %812 = vmatpush.msrb.mxu2 %v752_v31  ;;  %928 = vmatpush.msrb.mxu3 %v855_v33  ;;  %v941_v44 = vld [vmem:[%s2168_s22 + $0x28] sm:$0xff]  ;;  %v852_v48 = vld [vmem:[%s2163_s24 + $0x60] sm:$0xff]  ;;  %v850_v2 = vld [vmem:[%s2163_s24 + $0x50] sm:$0xff] }
  0x48   : > { %v710_v7 = vmul.f32 %v1868_v4, %v709_v6  ;;  %984 = vmatpush.msrb.mxu1 %v943_v34  ;;  %869 = vmatpush.msrb.mxu0 %v842_v36  ;;  %v940_v49 = vld [vmem:[%s2168_s22 + $0x20] sm:$0xff]  ;;  %v938_v3 = vld [vmem:[%s2168_s22 + $0x10] sm:$0xff]  ;;  %v849_v5 = vld [vmem:[%s2163_s24 + $0x48] sm:$0xff] }
  0x49   : > { %813 = vmatpush.msrb.mxu2 %v751_v35  ;;  %929 = vmatpush.msrb.mxu3 %v854_v38  ;;  %v1860_v56 = vld [vmem:[%s2490_s19] ss:$0 sm:$0xff]  ;;  %v937_v6 = vld [vmem:[%s2168_s22 + $0x8] sm:$0xff] }
  0x4a   : > { %v711_v8 = vadd.f32 %v1868_v4, %v710_v7  ;;  %985 = vmatpush.msrb.mxu1 %v942_v39  ;;  %870 = vmatpush.msrb.mxu0 %v841_v42  ;;  %v1861_v58 = vld [vmem:[%s2492_s25] ss:$0 sm:$0xff]  ;;  %v949_v7 = vld [vmem:[%s2168_s22 + $0x68] sm:$0xff] }
  0x4b   : > { %814 = vmatpush.msrb.mxu2 %v750_v40  ;;  %930 = vmatpush.msrb.mxu3 %v853_v43  ;;  %v944_v15 = vld [vmem:[%s2168_s22 + $0x40] sm:$0xff] }
  0x4c   : > { %v2213_v9 = vsel %vm712_vm2, %v1868_v4, %v711_v8  ;;  %986 = vmatpush.msrb.mxu1 %v941_v44  ;;  %871 = vmatpush.msrb.mxu0 %v840_v46  ;;  %v950_v4 = vld [vmem:[%s2168_s22 + $0x70] sm:$0xff]  ;;  %v848_v8 = vld [vmem:[%s2163_s24 + $0x40] sm:$0xff] }
  0x4d   : > { %815 = vmatpush.msrb.mxu2 %v749_v45  ;;  %931 = vmatpush.msrb.mxu3 %v852_v48 }
  0x4e   : > { %987 = vmatpush.msrb.mxu1 %v940_v49 }
  0xb7   : > { %v706_v10 = vpop.xlane.xlu0 %705 }
  0xb8   : > { %v714_v11 = vmul.f32 %v2213_v9, %v706_v10  ;;  %v936_v10 = vld [vmem:[%s2168_s22] sm:$0xff] }
  0xba   : > { %v2217_v12 = vsub.f32 %v2209_v1, %v714_v11  ;;  %v948_v11 = vld [vmem:[%s2168_s22 + $0x60] sm:$0xff] }
  0xbc   : > { %v716_v13 = vmul.f32 %v2217_v12, %v2217_v12 }
  0xbe   : > { %v717_v14 = vsel %vm703_vm1, %v716_v13, 0.0  ;;  %v946_v13 = vld [vmem:[%s2168_s22 + $0x50] sm:$0xff] }
  0xbf   : > { %718 = vadd.xlane.f32.xlu0 %v717_v14  ;;  %v945_v14 = vld [vmem:[%s2168_s22 + $0x48] sm:$0xff] }
 0x132   : > { %v719_v37 = vpop.xlane.xlu0 %718 }
 0x133   : > { %v720_v41 = vmul.f32 %v719_v37, %v2213_v9 }
 0x135   : > { %v721_v47 = vadd.f32 1e-05, %v720_v41 }
 0x137   : > { %1869 = vrsqrt.f32 %v721_v47  ;;  %vm728_vm4 = vweird.f32 %v721_v47 }
 0x13d   : > { %v1870_v50 = vpop.eup %1869 }
 0x13e   : > { %v723_v51 = vmul.f32 %v1870_v50, %v721_v47  ;;  %vm729_vm3 = vweird.f32 %v1870_v50 }
 0x13f   : > { %vm730_vm5 = vmor %vm728_vm4, %vm729_vm3 }
 0x140   : > { %v724_v52 = vmul.f32 %v1870_v50, %v723_v51 }
 0x142   : > { %v725_v53 = vmul.f32 0.5, %v724_v52 }
 0x144   : > { %v726_v54 = vsub.f32 1.5, %v725_v53 }
 0x146   : > { %v727_v55 = vmul.f32 %v1870_v50, %v726_v54 }
 0x148   : > { %v731_v57 = vsel %vm730_vm5, %v1870_v50, %v727_v55 }
 0x149   : > { %v732_v59 = vmul.f32 %v731_v57, %v2217_v12  ;;  %v947_v12 = vld [vmem:[%s2168_s22 + $0x58] sm:$0xff]  ;;  %s2493_s22 = scalar_lea.vmem %s2436_s7, %s2141_s26 }
 0x14b   : > { %v736_v60 = vmul.f32 %v1860_v56, %v732_v59 }
 0x14d   : > { %v740_v61 = vadd.f32 %v1861_v58, %v736_v60 }
 0x14f   : > { %1747 = vmatmul.msk.f32.vlgmr.msra.gmra.mxu0 %vm703_vm1, %v740_v61  ;;  %1748 = vmatmul.msk.f32.vlgmr.msra.gmra.mxu2 %vm703_vm1, %v740_v61 }
 0x150   : > { %1750 = vmatmul.msk.f32.vlgmr.msra.gmra.mxu3 %vm703_vm1, %v740_v61  ;;  %1752 = vmatmul.msk.f32.vlgmr.msra.gmra.mxu1 %vm703_vm1, %v740_v61 }
 0x151   : > { %908 = vmatpush.msra.mxu2 %v851_v62  ;;  %964 = vmatpush.msra.mxu0 %v939_v63  ;;  %v1279_v62 = vld [vmem:[%s2174_s14 + $0x8] sm:$0xff] }
 0x152   : > { %1024 = vmatpush.msra.mxu3 %v951_v0 }
 0x153   : > { %909 = vmatpush.msra.mxu2 %v850_v2  ;;  %965 = vmatpush.msra.mxu0 %v938_v3 }
 0x154   : > { %1025 = vmatpush.msra.mxu3 %v950_v4 }
 0x155   : > { %910 = vmatpush.msra.mxu2 %v849_v5  ;;  %966 = vmatpush.msra.mxu0 %v937_v6 }
 0x156   : > { %1026 = vmatpush.msra.mxu3 %v949_v7 }
 0x157   : > { %1749 = vmatmul.msk.f32.vlgmr.msrb.gmra.mxu2 %vm703_vm1, %v740_v61  ;;  %1751 = vmatmul.msk.f32.vlgmr.msrb.gmra.mxu0 %vm703_vm1, %v740_v61 }
 0x158   : > { %1754 = vmatmul.msk.f32.vlgmr.msrb.gmra.mxu3 %vm703_vm1, %v740_v61  ;;  %1756 = vmatmul.msk.f32.vlgmr.msrb.gmra.mxu1 %vm703_vm1, %v740_v61 }
 0x159   : > { %911 = vmatpush.msra.mxu2 %v848_v8  ;;  %967 = vmatpush.msra.mxu0 %v936_v10 }
 0x15a   : > { %1027 = vmatpush.msra.mxu3 %v948_v11  ;;  %v1278_v11 = vld [vmem:[%s2174_s14] sm:$0xff] }
 0x15b   : > { %1004 = vmatpush.msrb.mxu2 %v947_v12  ;;  %v1283_v12 = vld [vmem:[%s2174_s14 + $0x28] sm:$0xff] }
 0x15d   : > { %1005 = vmatpush.msrb.mxu2 %v946_v13  ;;  %v1281_v13 = vld [vmem:[%s2174_s14 + $0x18] sm:$0xff] }
 0x15f   : > { %1006 = vmatpush.msrb.mxu2 %v945_v14  ;;  %1755 = vmatmul.msk.f32.vlgmr.msra.gmra.mxu0 %vm703_vm1, %v740_v61  ;;  %v1282_v14 = vld [vmem:[%s2174_s14 + $0x20] sm:$0xff] }
 0x160   : > { %1753 = vmatmul.msk.f32.vlgmr.msra.gmra.mxu2 %vm703_vm1, %v740_v61  ;;  %1758 = vmatmul.msk.f32.vlgmr.msra.gmra.mxu3 %vm703_vm1, %v740_v61 }
 0x161   : > { %1007 = vmatpush.msrb.mxu2 %v944_v15  ;;  %v1280_v15 = vld [vmem:[%s2174_s14 + $0x10] sm:$0xff] }
 0x168   : > { %1757 = vmatmul.msk.f32.vlgmr.msrb.gmra.mxu2 %vm703_vm1, %v740_v61 }
 0x1cc   : > { %v777_v16 = vpop.f32.mrf.mxu0 }
 0x1cd   : > { %v893_v17 = vpop.f32.mrf.mxu1 }
 0x1ce   : > { %1761 = vmatpush.xpose.msk.msra.mxu1 %vm1032_vm6, %v893_v17 }
 0x1d2   : > { %v797_v18 = vpop.f32.mrf.mxu2 }
 0x1d3   : > { %v837_v19 = vpop.f32.mrf.mxu3  ;;  %1762 = vmatmul.msk.f32.vlgmr.msra.gmra.mxu1 %vm1032_vm6, %v797_v18  ;;  %v1284_v18 = vld [vmem:[%s2174_s14 + $0x30] sm:$0xff] }
 0x1d4   : > { %v873_v20 = vpop.f32.mrf.mxu0 }
 0x1d5   : > { %v989_v21 = vpop.f32.mrf.mxu1  ;;  %1759 = vmatpush.xpose.msk.msrb.mxu0 %vm1032_vm6, %v873_v20 }
 0x1d6   : > { %1227 = vmatpush.msrb.mxu1 %v989_v21 }
 0x1d8   : > { %1760 = vmatmul.msk.f32.vlgmr.msrb.gmra.mxu0 %vm1032_vm6, %v777_v16  ;;  %1326 = vmatpush.msra.mxu1 %v1281_v13  ;;  %v1285_v16 = vld [vmem:[%s2174_s14 + $0x38] sm:$0xff] }
 0x1da   : > { %v817_v22 = vpop.f32.mrf.mxu2  ;;  %1327 = vmatpush.msra.mxu1 %v1280_v15 }
 0x1db   : > { %v933_v23 = vpop.f32.mrf.mxu3 }
 0x1dc   : > { %1765 = vmatpush.xpose.msk.msrb.mxu3 %vm1032_vm6, %v933_v23  ;;  %v969_v24 = vpop.f32.mrf.mxu0 }
 0x1dd   : > { %1204 = vmatpush.msra.mxu0 %v969_v24 }
 0x1df   : > { %1766 = vmatmul.msk.f32.vlgmr.msrb.gmra.mxu3 %vm1032_vm6, %v837_v19  ;;  %1303 = vmatpush.msrb.mxu0 %v1279_v62  ;;  %v1467_v62 = vld [vmem:[%s2201_s17 + $0x20] sm:$0xff] }
 0x1e1   : > { %1304 = vmatpush.msrb.mxu0 %v1278_v11 }
 0x1e3   : > { %v913_v25 = vpop.f32.mrf.mxu2  ;;  %v1029_v26 = vpop.f32.mrf.mxu3 }
 0x1e4   : > { %1763 = vmatpush.xpose.msk.msra.mxu2 %vm1032_vm6, %v913_v25  ;;  %1273 = vmatpush.msra.mxu3 %v1029_v26 }
 0x1e6   : > { %1372 = vmatpush.msrb.mxu3 %v1285_v16 }
 0x1e7   : > { %1764 = vmatmul.msk.f32.vlgmr.msra.gmra.mxu2 %vm1032_vm6, %v817_v22 }
 0x1e8   : > { %1373 = vmatpush.msrb.mxu3 %v1284_v18 }
 0x1eb   : > { %v1009_v27 = vpop.f32.mrf.mxu2 }
 0x1ec   : > { %1250 = vmatpush.msrb.mxu2 %v1009_v27 }
 0x1ee   : > { %1349 = vmatpush.msra.mxu2 %v1283_v12 }
 0x1f0   : > { %1350 = vmatpush.msra.mxu2 %v1282_v14 }
 0x250   : > { %v1082_v31 = vpop.f32.mrf.mxu1 }
 0x251   : > { %v1138_v32 = vmul.f32 0.25, %v1082_v31 }
 0x253   : > { %v1145_v33 = vsel %vm1141_vm7, %v1138_v32, -inf }
 0x255   : > { %v1056_v28 = vpop.f32.mrf.mxu0 }
 0x256   : > { %v1137_v29 = vmul.f32 0.25, %v1056_v28 }
 0x258   : > { %v1142_v30 = vsel %vm1141_vm7, %v1137_v29, -inf }
 0x259   : > { %1143 = vmax.xlane.f32.xlu2 %v1142_v30 }
 0x261   : > { %1146 = vmax.xlane.f32.xlu2 %v1145_v33  ;;  %v1862_v33 = vld [vmem:[%s2493_s22] ss:$0 sm:$0xff] }
 0x262   : > { %v1134_v37 = vpop.f32.mrf.mxu3 }
 0x263   : > { %v1140_v38 = vmul.f32 0.25, %v1134_v37 }
 0x265   : > { %v1151_v39 = vsel %vm1141_vm7, %v1140_v38, -inf }
 0x26a   : > { %v1108_v34 = vpop.f32.mrf.mxu2 }
 0x26b   : > { %v1139_v35 = vmul.f32 0.25, %v1108_v34 }
 0x26d   : > { %v1148_v36 = vsel %vm1141_vm7, %v1139_v35, -inf }
 0x26e   : > { %1149 = vmax.xlane.f32.xlu1 %v1148_v36 }
 0x276   : > { %1152 = vmax.xlane.f32.xlu1 %v1151_v39 }
 0x2cc   : > { %v1144_v40 = vpop.xlane.xlu2 %1143 }
 0x2cd   : > { %v1154_v41 = vsub.f32 %v1137_v29, %v1144_v40 }
 0x2cf   : > { %v1158_v42 = vmul.f32 1.442695, %v1154_v41 }
 0x2d1   : > { %1871 = vpow2.f32 %v1158_v42  ;;  %v1426_v42 = vld [vmem:[%s2196_s6 + $0x18] sm:$0xff] }
 0x2d4   : > { %v1147_v45 = vpop.xlane.xlu2 %1146 }
 0x2d5   : > { %v1155_v48 = vsub.f32 %v1138_v32, %v1147_v45 }
 0x2d7   : > { %v1872_v43 = vpop.eup %1871  ;;  %v1160_v50 = vmul.f32 1.442695, %v1155_v48 }
 0x2d8   : > { %v1166_v44 = vsel %vm1141_vm7, %v1872_v43, 0.0 }
 0x2d9   : > { %1167 = vadd.xlane.f32.xlu2 %v1166_v44  ;;  %v1423_v44 = vld [vmem:[%s2196_s6] sm:$0xff] }
 0x2e1   : > { %v1150_v46 = vpop.xlane.xlu1 %1149 }
 0x2e2   : > { %v1156_v47 = vsub.f32 %v1139_v35, %v1150_v46 }
 0x2e4   : > { %v1162_v49 = vmul.f32 1.442695, %v1156_v47 }
 0x2e6   : > { %1873 = vpow2.f32 %v1162_v49 }
 0x2e7   : > { %1875 = vpow2.f32 %v1160_v50 }
 0x2e9   : > { %v1153_v51 = vpop.xlane.xlu1 %1152 }
 0x2ea   : > { %v1157_v52 = vsub.f32 %v1140_v38, %v1153_v51 }
 0x2ec   : > { %v1874_v53 = vpop.eup %1873  ;;  %v1164_v54 = vmul.f32 1.442695, %v1157_v52 }
 0x2ed   : > { %v1172_v55 = vsel %vm1141_vm7, %v1874_v53, 0.0  ;;  %v1876_v56 = vpop.eup %1875 }
 0x2ee   : > { %1877 = vpow2.f32 %v1164_v54  ;;  %1173 = vadd.xlane.f32.xlu0 %v1172_v55  ;;  %v1169_v59 = vsel %vm1141_vm7, %v1876_v56, 0.0 }
 0x2f4   : > { %v1878_v57 = vpop.eup %1877 }
 0x2f5   : > { %v1175_v58 = vsel %vm1141_vm7, %v1878_v57, 0.0 }
 0x2f6   : > { %1176 = vadd.xlane.f32.xlu1 %v1175_v58  ;;  %1170 = vadd.xlane.f32.xlu0 %v1169_v59  ;;  %v1470_v59 = vld [vmem:[%s2201_s17 + $0x38] sm:$0xff] }
 0x34c   : > { %v1168_v60 = vpop.xlane.xlu2 %1167 }
 0x34d   : > { %1879 = vrcp.f32 %v1168_v60  ;;  %v1469_v60 = vld [vmem:[%s2201_s17 + $0x30] sm:$0xff] }
 0x353   : > { %v1880_v61 = vpop.eup %1879 }
 0x354   : > { %v1182_v63 = vmul.f32 %v1880_v61, %v1872_v43  ;;  %v1425_v43 = vld [vmem:[%s2196_s6 + $0x10] sm:$0xff]  ;;  %v1468_v61 = vld [vmem:[%s2201_s17 + $0x28] sm:$0xff] }
 0x356   : > { %1767 = vmatmul.msk.f32.vlgmr.msra.gmra.mxu0 %vm1141_vm7, %v1182_v63  ;;  %v1466_v63 = vld [vmem:[%s2201_s17 + $0x18] sm:$0xff] }
 0x357   : > { %1446 = vmatpush.msra.mxu0 %v1426_v42 }
 0x359   : > { %1447 = vmatpush.msra.mxu0 %v1425_v43 }
 0x361   : > { %v1174_v0 = vpop.xlane.xlu0 %1173 }
 0x362   : > { %1881 = vrcp.f32 %v1174_v0  ;;  %v1465_v0 = vld [vmem:[%s2201_s17 + $0x10] sm:$0xff] }
 0x368   : > { %v1882_v2 = vpop.eup %1881 }
 0x369   : > { %v1184_v3 = vmul.f32 %v1882_v2, %v1874_v53  ;;  %v1177_v4 = vpop.xlane.xlu1 %1176  ;;  %v1171_v5 = vpop.xlane.xlu0 %1170  ;;  %v1464_v2 = vld [vmem:[%s2201_s17 + $0x8] sm:$0xff] }
 0x36a   : > { %1883 = vrcp.f32 %v1177_v4  ;;  %v1865_v4 = vld [vmem:[%s684_s2] ss:$0 sm:$0xff]  ;;  %s2497_s2 = sld [smem:[#allocation9_spill]] }
 0x36b   : > { %1885 = vrcp.f32 %v1171_v5  ;;  %1769 = vmatmul.msk.f32.vlgmr.msrb.gmra.mxu2 %vm1141_vm7, %v1184_v3  ;;  %v1463_v3 = vld [vmem:[%s2201_s17] sm:$0xff] }
 0x370   : > { %v1884_v6 = vpop.eup %1883  ;;  %p1777_p1 = scmp.ne.s32.totalorder %s2497_s2, 1 }
 0x371   : > { %v1886_v7 = vpop.eup %1885  ;;  %v1185_v8 = vmul.f32 %v1884_v6, %v1878_v57 }
 0x372   : > { %v1183_v10 = vmul.f32 %v1886_v7, %v1876_v56  ;;  %v1864_v56 = vld [vmem:[%s2495_s30] ss:$0 sm:$0xff] }
 0x373   : > { %1770 = vmatmul.msk.f32.vlgmr.msra.gmra.mxu3 %vm1141_vm7, %v1185_v8 }
 0x374   : > { %1768 = vmatmul.msk.f32.vlgmr.msrb.gmra.mxu1 %vm1141_vm7, %v1183_v10 }
 0x375   : > { %1487 = vmatpush.msrb.mxu1 %v1470_v59 }
 0x377   : > { %1488 = vmatpush.msrb.mxu1 %v1469_v60 }
 0x379   : > { %1489 = vmatpush.msrb.mxu1 %v1468_v61 }
 0x37b   : > { %1490 = vmatpush.msrb.mxu1 %v1467_v62 }
 0x37d   : > { %1491 = vmatpush.msrb.mxu1 %v1466_v63 }
 0x37f   : > { %1492 = vmatpush.msrb.mxu1 %v1465_v0 }
 0x381   : > { %1493 = vmatpush.msrb.mxu1 %v1464_v2 }
 0x383   : > { %1494 = vmatpush.msrb.mxu1 %v1463_v3 }
 0x3d3   : > { %v1206_v17 = vpop.f32.mrf.mxu0 }
 0x3d4   : > { %1771 = vmatmul.msk.f32.vlgmr.msrb.gmra.mxu0 %vm1032_vm6, %v1206_v17  ;;  %v1866_v17 = vld [vmem:[%s692_s4] ss:$0 sm:$0xff] }
 0x3ee   : > { %v1252_v19 = vpop.f32.mrf.mxu2 }
 0x3ef   : > { %1773 = vmatmul.msk.f32.vlgmr.msra.gmra.mxu2 %vm1032_vm6, %v1252_v19 }
 0x3f1   : > { %v1229_v20 = vpop.f32.mrf.mxu1 }
 0x3f2   : > { %1772 = vmatmul.msk.f32.vlgmr.msra.gmra.mxu1 %vm1032_vm6, %v1229_v20 }
 0x3f6   : > { %v1275_v21 = vpop.f32.mrf.mxu3 }
 0x3f7   : > { %1774 = vmatmul.msk.f32.vlgmr.msrb.gmra.mxu3 %vm1032_vm6, %v1275_v21 }
 0x451   : > { %v1306_v23 = vpop.f32.mrf.mxu0 }
 0x452   : > { %v1378_v26 = vsel %vm703_vm1, %v1306_v23, 0.0 }
 0x46f   : > { %v1329_v22 = vpop.f32.mrf.mxu1 }
 0x470   : > { %v1379_v25 = vsel %vm703_vm1, %v1329_v22, 0.0 }
 0x471   : > { %v1380_v28 = vadd.f32 %v1379_v25, %v1378_v26 }
 0x472   : > { %v1352_v24 = vpop.f32.mrf.mxu2 }
 0x473   : > { %v1381_v27 = vsel %vm703_vm1, %v1352_v24, 0.0 }
 0x474   : > { %v1382_v29 = vadd.f32 %v1381_v27, %v1380_v28 }
 0x47a   : > { %v1375_v30 = vpop.f32.mrf.mxu3 }
 0x47b   : > { %v1383_v31 = vsel %vm703_vm1, %v1375_v30, 0.0 }
 0x47c   : > { %v1384_v32 = vadd.f32 %v1383_v31, %v1382_v29 }
 0x47e   : > { %v1385_v34 = vadd.f32 %v1384_v32, %v2209_v1  ;;  %v1424_v1 = vld [vmem:[%s2196_s6 + $0x8] sm:$0xff] }
 0x47f   : > { %1448 = vmatpush.msra.mxu0 %v1424_v1 }
 0x480   : > { %v2336_v35 = vadd.f32 %v1862_v33, %v1385_v34 }
 0x481   : > { %1449 = vmatpush.msra.mxu0 %v1423_v44 }
 0x482   : > { %v1393_v36 = vsel %vm703_vm1, %v2336_v35, 0.0 }
 0x483   : > { %1394 = vadd.xlane.f32.xlu1 %v1393_v36 }
 0x4f6   : > { %v1395_v37 = vpop.xlane.xlu1 %1394 }
 0x4f7   : > { %v1396_v38 = vmul.f32 %v1395_v37, %v2213_v9 }
 0x4f9   : > { %v1397_v39 = vsub.f32 %v2336_v35, %v1396_v38 }
 0x4fb   : > { %v1398_v40 = vmul.f32 %v1397_v39, %v1397_v39 }
 0x4fd   : > { %v1399_v41 = vsel %vm703_vm1, %v1398_v40, 0.0 }
 0x4fe   : > { %1400 = vadd.xlane.f32.xlu2 %v1399_v41 }
 0x571   : > { %v1401_v45 = vpop.xlane.xlu2 %1400 }
 0x572   : > { %v1402_v46 = vmul.f32 %v1401_v45, %v2213_v9  ;;  %v1863_v9 = vld [vmem:[%s2494_s29] ss:$0 sm:$0xff] }
 0x574   : > { %v1403_v47 = vadd.f32 1e-05, %v1402_v46 }
 0x576   : > { %1887 = vrsqrt.f32 %v1403_v47  ;;  %vm1410_vm9 = vweird.f32 %v1403_v47 }
 0x57c   : > { %v1888_v48 = vpop.eup %1887 }
 0x57d   : > { %v1405_v49 = vmul.f32 %v1888_v48, %v1403_v47  ;;  %vm1411_vm8 = vweird.f32 %v1888_v48 }
 0x57e   : > { %vm1412_vm10 = vmor %vm1410_vm9, %vm1411_vm8 }
 0x57f   : > { %v1406_v50 = vmul.f32 %v1888_v48, %v1405_v49 }
 0x581   : > { %v1407_v51 = vmul.f32 0.5, %v1406_v50 }
 0x583   : > { %v1408_v52 = vsub.f32 1.5, %v1407_v51 }
 0x585   : > { %v1409_v53 = vmul.f32 %v1888_v48, %v1408_v52 }
 0x587   : > { %v1413_v54 = vsel %vm1412_vm10, %v1888_v48, %v1409_v53 }
 0x588   : > { %v1414_v55 = vmul.f32 %v1413_v54, %v1397_v39 }
 0x58a   : > { %v1418_v57 = vmul.f32 %v1863_v9, %v1414_v55 }
 0x58c   : > { %v1422_v58 = vadd.f32 %v1864_v56, %v1418_v57 }
 0x58e   : > { %1775 = vmatmul.msk.f32.vlgmr.msra.gmra.mxu0 %vm703_vm1, %v1422_v58 }
 0x60b   : > { %v1451_v5 = vpop.f32.mrf.mxu0 }
 0x60c   : > { %v1452_v6 = vadd.f32 %v1865_v4, %v1451_v5 }
 0x60e   : > { %v1455_v7 = vmul.f32 0.044715, %v1452_v6  ;;  %v1454_v14 = vmul.f32 0.5, %v1452_v6 }
 0x610   : > { %v1456_v8 = vmul.f32 %v1455_v7, %v1452_v6 }
 0x612   : > { %v1457_v10 = vmul.f32 %v1456_v8, %v1452_v6 }
 0x614   : > { %v1458_v11 = vadd.f32 %v1457_v10, %v1452_v6 }
 0x616   : > { %v1459_v12 = vmul.f32 0.7978846, %v1458_v11 }
 0x618   : > { %1889 = vtanh.f32 %v1459_v12 }
 0x61e   : > { %v1890_v13 = vpop.eup %1889 }
 0x61f   : > { %v1461_v15 = vadd.f32 1.0, %v1890_v13 }
 0x621   : > { %v1462_v16 = vmul.f32 %v1461_v15, %v1454_v14 }
 0x623   : > { %1776 = vmatmul.msk.f32.vlgmr.msrb.gmra.mxu1 %vm1475_vm11, %v1462_v16 }
 0x6a0   : > { %v1496_v18 = vpop.f32.mrf.mxu1 }
 0x6a1   : > { %v1497_v19 = vadd.f32 %v1866_v17, %v1496_v18  ;;  %1504 = sbr.rel (%p1777_p1) target bundleno = 1703 (0x6a7), region = 84 }
 0x6a3   : > { %v1499_v20 = vadd.f32 %v1497_v19, %v2336_v35 }
 0x6a5   : > { %1500 = vst.msk [vmem:[#allocation2] sm:$0xff] %vm703_vm1, %v1499_v20 }
 0x6a6   : > { %1505 = vst.msk [vmem:[%s637_s18] sm:$0xff] %vm703_vm1, %v1499_v20 }
 0x6a7 PF: > { %s2498_s19 = sld [smem:[#allocation10_spill]]  ;;  %s1519_s24 = sshll.u32 %s637_s18, 4  ;;  %s1520_s24 = int_to_ptr.vmem [resolvable:$true] %s1519_s24 }
 0x6a8   : > { %s2499_s28 = sld [smem:[#allocation7_spill]] }
 0x6a9   : > { %s2501_s25 = sld [smem:[#allocation26_spill]] }
 0x6ad   : > { %s1779_s26 = sshll.u32 %s2498_s19, 3 }
 0x6ae   : > { %s2502_s6 = sand.u32 1, %s2499_s28  }
 0x6af   : > { %s1517_s14 = scalar_lea.hbm %s2501_s25, %s1779_s26  ;;  %s1507_s21 = scalar_lea.sflag [#allocation4], %s2502_s6 }
 0x6b0   : > { %s1521_s22 = sshll.u32 %s1517_s14, 4  ;;  %s1911_s0 = scalar_lea.hbm %s2501_s25, 16  ;;  %s1522_s22 = int_to_ptr.hbm [resolvable:$true] %s1521_s22 }
 0x6b1   : > { %s1905_s29 = sshra.s32 %s1522_s22, 4  ;;  %s1906_s29 = int_to_ptr.hbm [resolvable:$true] %s1905_s29 }
 0x6b2   : > { %s1907_s20 = scalar_lea.hbm %s1906_s29, 8  ;;  %p1912_p6 = scmp.lt.s32.totalorder %s1906_s29, %s2501_s25 }
 0x6b3   : > { %p1908_p2 = scmp.ne.s32.totalorder %s1906_s29, %s1907_s20  ;;  %p1913_p7 = scmp.lt.s32.totalorder %s1911_s0, %s1907_s20 }
 0x6b5   : > { %p1909_p4 = pnand %p1908_p2, %p2112_p3  ;;  %p1914_p8 = por %p1913_p7, %p1912_p6 }
 0x6b7   : > { %p1910_p5 = pneg %p1909_p4 }
 0x6b9   : > { %p1915_p10 = pnand %p1914_p8, %p1910_p5 }
 0x6bb   : > { %1918 = shalt.err (!%p1915_p10)
}
 0x6bc   : > { %1788 = dma.vmem_to_hbm [thread:$0]  (%p2112_p3), %s1520_s24, 128, %s1522_s22, %s1507_s21  }
 0x6bd PF: > { %s2503_s23 = sld [smem:[#allocation13_spill]] }
 0x6be   : > { %s2504_s18 = sld [smem:[#allocation6_spill]] }
 0x6c3   : > { %p1794_p11 = scmp.ge.s32.totalorder %s2503_s23, 2 }
 0x6c4   : > { %s1533_s16 = sand.u32 1, %s2504_s18  }
 0x6c5   : > { %p1791_p12 = pnand %p1794_p11, %p2122_p9  ;;  %s1534_s2 = scalar_lea.sflag [#allocation4], %s1533_s16 }
 0x6c7   : > { %p1792_p13 = pneg %p1791_p12 }
 0x6c9   : > { %1952 = dma.done.wait (%p1792_p13), %s1534_s2, 128  }
 0x6ca   : > { %1954 = vsyncadd (%p1792_p13), %s1534_s2, 4294967168  ;;  %s27_s20 = sadd.s32 1, %s2503_s23   ;;  %s2506_s29 = sld [smem:[#allocation7_spill]] }
 0x6cb   : > { %p24_p0 = scmp.ge.s32.totalorder %s27_s20, 6   ;;  %s2507_s30 = sld [smem:[#allocation8_spill]] }
 0x6cc   : > { %s2508_s15 = sld [smem:[#allocation18_spill]] }
 0x6cd   : > { %s2509_s16 = sld [smem:[#allocation11_spill]]  ;;  %26 = sbr.rel (!%p24_p0) target bundleno = 14 (0xe), region = 158 }
 0x6ce   : > { %s2510_s17 = sld [smem:[#allocation12_spill]] }
 0x6cf   : > { %s2511_s18 = sld [smem:[#allocation14_spill]] }
 0x6d0   : > { %s2512_s19 = sld [smem:[#allocation16_spill]] }
 0x6d2   :  { %1540 = vsyncpa [#allocation4], 1 }
 0x6d3   :  { %1542 = vsyncpa [#allocation4 + $0x1], 1 }

</bundles_post_ra>
